<compile_context>
chip_gen: v7x
topology: tpu7x:2x2x1
jax: 0.10.0
libtpu: 0.0.40
codegen_flags: <defaults>
</compile_context>

<pallas_src>
import jax
import jax.numpy as jnp
from jax.experimental import pallas as pl
from jax.experimental.pallas import tpu as pltpu

_LANES = 128
_SUBLANES = 8
_MIN_SPLIT_ROWS = 64   # only force a 2-block split when each half has >= 64 rows


def _round_up(x: int, m: int) -> int:
    return ((x + m - 1) // m) * m


def _sublane_multiple(itemsize: int) -> int:
    # Native sublane packing: 8 rows for 32-bit, 16 for 16-bit, 32 for 8-bit.
    return _SUBLANES * max(1, 4 // max(1, itemsize))


def _pick_tile_rows(itemsize: int) -> int:
    """Generation-aware max tile rows (per input buffer)."""
    try:
        kind = jax.devices()[0].device_kind.lower()
    except Exception:  # pragma: no cover
        kind = ""
    if "v5 lite" in kind or "v5e" in kind or "v5lite" in kind:
        base = 4096          # 2 MiB/buffer f32 -> ~8 MiB resident (v5e default 16 MiB)
    elif "v6" in kind or "trillium" in kind or "v7" in kind:
        base = 8192          # 4 MiB/buffer f32 -> ~16 MiB resident
    else:
        base = 4096          # conservative for v2/v3/v4/unknown
    # Same VMEM footprint for narrower input dtypes -> more elements per step.
    return base * max(1, 4 // max(1, itemsize))


def _loss_elems(p, t):
    """Elementwise asymmetric loss, matching the torch reference exactly."""
    p = p.astype(jnp.float32)
    t = t.astype(jnp.float32)
    d = p - t
    rd = t - p
    sq = d * d
    big = jnp.where(rd > jnp.float32(0.1), jnp.float32(300.0), jnp.float32(160.0)) * rd
    coeff = jnp.where(p > t, jnp.float32(1.0),
                      jnp.where(rd < jnp.float32(0.02), jnp.float32(2.0), big))
    return coeff * sq


def _make_kernel(tile_rows: int, num_inner: int, full_blocks: int,
                 rows_rem: int, has_edge: bool):
    groups = tile_rows // _SUBLANES

    def _partial(x):
        # Leading-axis sum = pure vreg-to-vreg VPU adds (no XLU).
        return x.reshape(groups, _SUBLANES, _LANES).sum(axis=0)

    def kernel(p_ref, t_ref, out_ref, acc_ref):
        k = pl.program_id(1)

        @pl.when(k == 0)
        def _init():
            acc_ref[...] = jnp.zeros_like(acc_ref)

        pv = p_ref[...].astype(jnp.float32)
        tv = t_ref[...].astype(jnp.float32)
        d = pv - tv
        rd = tv - pv
        sq = d * d
        # torch.where(p > t, (p-t)**2,
        #   where(t-p < 0.02, 2*(p-t)**2,
        #     where(t-p > 0.1, 300*(t-p)*(p-t)**2, 160*(t-p)*(p-t)**2)))
        big = jnp.where(rd > jnp.float32(0.1), jnp.float32(300.0),
                        jnp.float32(160.0)) * rd          # one vmul, constant selected
        coeff = jnp.where(pv > tv, jnp.float32(1.0),
                          jnp.where(rd < jnp.float32(0.02), jnp.float32(2.0), big))
        loss = coeff * sq

        if not has_edge:
            # Every block is fully in-bounds: straight accumulate, no masking.
            acc_ref[...] += _partial(loss)
        else:
            blk = pl.program_id(0) * num_inner + k

            @pl.when(blk < full_blocks)
            def _full():
                acc_ref[...] += _partial(loss)

            if rows_rem:
                # Only the single ragged last block pays for iota + select.
                @pl.when(blk == full_blocks)
                def _ragged():
                    row = jax.lax.broadcasted_iota(jnp.int32, (tile_rows, _LANES), 0)
                    acc_ref[...] += _partial(
                        jnp.where(row < rows_rem, loss, jnp.float32(0.0)))
            # blk beyond the last real block = phantom block from the 2-way core
            # split with an odd block count: contributes nothing.

        @pl.when(k == pl.num_programs(1) - 1)
        def _finalize():
            out_ref[0, 0] = jnp.sum(acc_ref[...])   # one XLU reduce + scalar store

    return kernel


def asymmetric_loss(y_pred: jax.Array, y_true: jax.Array,
                    max_tile_rows: int | None = None) -> jax.Array:
    """Scalar mean of the asymmetric loss, computed in a Pallas TPU kernel."""
    assert y_pred.shape == y_true.shape
    n = int(y_pred.size)

    p_flat = y_pred.reshape(-1)
    t_flat = y_true.reshape(-1)

    itemsize = y_pred.dtype.itemsize
    sub = _sublane_multiple(itemsize)

    # Kernel handles the (sub * 128)-aligned prefix (free reshape, no pad copy).
    rows_aligned = (n // (_LANES * sub)) * sub
    n_main = rows_aligned * _LANES

    total = jnp.float32(0.0)

    if n_main > 0:
        if n_main == n:
            p2d = p_flat.reshape(rows_aligned, _LANES)
            t2d = t_flat.reshape(rows_aligned, _LANES)
        else:
            # TODO(synk): ragged inputs still materialize one sliced copy of each
            # input; a fully copy-free ragged path would need manual 1-D DMA.
            p2d = jax.lax.slice(p_flat, (0,), (n_main,)).reshape(rows_aligned, _LANES)
            t2d = jax.lax.slice(t_flat, (0,), (n_main,)).reshape(rows_aligned, _LANES)

        if max_tile_rows is None:
            max_tile = _pick_tile_rows(itemsize)
        else:
            max_tile = max(sub, (max_tile_rows // sub) * sub)

        tile_rows = min(max_tile, rows_aligned)
        # Ensure at least two blocks for the 2-way core split when worthwhile.
        if tile_rows == rows_aligned and rows_aligned >= 2 * _MIN_SPLIT_ROWS:
            tile_rows = _round_up(rows_aligned // 2, sub)

        num_real_blocks = -(-rows_aligned // tile_rows)
        full_blocks = rows_aligned // tile_rows
        rows_rem = rows_aligned - full_blocks * tile_rows

        # Unconditional 2-way split whenever there is more than one block
        # (v7x megacore; harmless elsewhere). Odd counts -> one phantom block.
        num_par = 2 if num_real_blocks >= 2 else 1
        num_inner = -(-num_real_blocks // num_par)
        num_phantom = num_par * num_inner - num_real_blocks
        has_edge = (rows_rem > 0) or (num_phantom > 0)

        last_blk = num_real_blocks - 1
        if num_phantom > 0:
            def idx_map(p, k):
                # Clamp phantom blocks onto the last real block (in-bounds DMA);
                # their accumulation is skipped inside the kernel.
                return (jnp.minimum(p * num_inner + k, last_blk), 0)
        else:
            def idx_map(p, k):
                return (p * num_inner + k, 0)

        tile_bytes = tile_rows * _LANES * itemsize
        vmem_limit = int(2 * 2 * tile_bytes + (16 << 20))  # 2 inputs x 2 buffers + headroom

        partials = pl.pallas_call(
            _make_kernel(tile_rows, num_inner, full_blocks, rows_rem, has_edge),
            out_shape=jax.ShapeDtypeStruct((num_par, 1), jnp.float32),
            grid_spec=pltpu.PrefetchScalarGridSpec(
                num_scalar_prefetch=0,
                grid=(num_par, num_inner),
                in_specs=[
                    pl.BlockSpec((tile_rows, _LANES), idx_map),
                    pl.BlockSpec((tile_rows, _LANES), idx_map),
                ],
                out_specs=pl.BlockSpec((1, 1), lambda p, k: (p, 0),
                                       memory_space=pltpu.SMEM),
                scratch_shapes=[pltpu.VMEM((_SUBLANES, _LANES), jnp.float32)],
            ),
            compiler_params=pltpu.CompilerParams(
                dimension_semantics=("parallel", "arbitrary"),
                vmem_limit_bytes=vmem_limit,
            ),
        )(p2d, t2d)
        total = total + jnp.sum(partials)

    if n_main < n:
        # Tiny (< sub*128 + 127 element) tail folded in with plain jnp — no pad copy.
        total = total + jnp.sum(_loss_elems(p_flat[n_main:], t_flat[n_main:]))

    return total / jnp.float32(n)


def _reference(y_pred, y_true):
    return _loss_elems(y_pred, y_true).mean()


if __name__ == "__main__":
    # Primary small NCHW-like example.
    k1, k2 = jax.random.split(jax.random.PRNGKey(0))
    shape = (2, 4, 16, 16)
    y_pred = jax.random.uniform(k1, shape, dtype=jnp.float32)
    y_true = jax.random.uniform(k2, shape, dtype=jnp.float32)
    out = jax.block_until_ready(asymmetric_loss(y_pred, y_true))
    ref = jax.block_until_ready(_reference(y_pred, y_true))
    assert jnp.allclose(out, ref, rtol=1e-5, atol=1e-6), (out, ref)

    # Extra coverage:
    #  - multi-block input with the 2-way core split
    #  - ragged element count (jnp tail fold)
    #  - forced small tile -> odd block count -> phantom block + clamped index map
    #  - bf16 inputs (in-kernel cast, doubled tile rows)
    cases = [
        ((2, 4, 256, 256), jnp.float32, None),
        ((3, 5, 37, 41), jnp.float32, None),
        ((3, 5, 37, 41), jnp.float32, 64),
        ((2, 4, 64, 64), jnp.bfloat16, None),
    ]
    for idx, (shp, dt, mtr) in enumerate(cases, start=1):
        ka, kb = jax.random.split(jax.random.PRNGKey(idx))
        yp = jax.random.uniform(ka, shp, dtype=jnp.float32).astype(dt)
        yt = jax.random.uniform(kb, shp, dtype=jnp.float32).astype(dt)
        o = jax.block_until_ready(asymmetric_loss(yp, yt, max_tile_rows=mtr))
        r = jax.block_until_ready(_reference(yp, yt))
        assert jnp.allclose(o, r, rtol=1e-4, atol=1e-5), (shp, dt, mtr, o, r)

    print("KERNEL_OK")
</pallas_src>

<mosaic_0001>
module attributes {stable_mosaic.version = 11 : i64} {
  func.func @kernel(%arg0: i32, %arg1: i32, %arg2: memref<16x128xf32, #tpu.memory_space<vmem>>, %arg3: memref<16x128xf32, #tpu.memory_space<vmem>>, %arg4: memref<1x1xf32, #tpu.memory_space<smem>>, %arg5: memref<8x128xf32, #tpu.memory_space<vmem>>) attributes {dimension_semantics = [#tpu.dimension_semantics<parallel>, #tpu.dimension_semantics<arbitrary>], iteration_bounds = array<i64: 1, 1>, scalar_prefetch = 0 : i64, scratch_operands = 1 : i64, tpu.core_type = #tpu.core_type<tc>, window_params = [{transform_indices = @transform_0, window_bounds = array<i64: 16, 128>}, {transform_indices = @transform_1, window_bounds = array<i64: 16, 128>}, {transform_indices = @transform_2, window_bounds = array<i64: 1, 1>}]} {
    %c0_i32 = arith.constant 0 : i32
    %0 = arith.cmpi eq, %arg1, %c0_i32 : i32
    %1 = arith.extui %0 : i1 to i32
    %c0_i32_0 = arith.constant 0 : i32
    %2 = arith.cmpi ne, %1, %c0_i32_0 : i32
    scf.if %2 {
      %cst_16 = arith.constant 0.000000e+00 : f32
      %30 = vector.broadcast %cst_16 : f32 to vector<8x128xf32>
      %c0_17 = arith.constant 0 : index
      %c0_18 = arith.constant 0 : index
      %31 = vector.load %arg5[%c0_17, %c0_18] : memref<8x128xf32, #tpu.memory_space<vmem>>, vector<8x128xf32>
      tpu.vector_store %arg5[%c0_17, %c0_18], %30 {strides = array<i32>} : memref<8x128xf32, #tpu.memory_space<vmem>>, vector<8x128xf32>,
    } else {
    }
    %c0 = arith.constant 0 : index
    %c0_1 = arith.constant 0 : index
    %3 = vector.load %arg2[%c0, %c0_1] : memref<16x128xf32, #tpu.memory_space<vmem>>, vector<16x128xf32>
    %c0_2 = arith.constant 0 : index
    %c0_3 = arith.constant 0 : index
    %4 = vector.load %arg3[%c0_2, %c0_3] : memref<16x128xf32, #tpu.memory_space<vmem>>, vector<16x128xf32>
    %5 = arith.subf %3, %4 : vector<16x128xf32>
    %6 = arith.subf %4, %3 : vector<16x128xf32>
    %7 = arith.mulf %5, %5 : vector<16x128xf32>
    %cst = arith.constant 1.000000e-01 : f32
    %8 = vector.broadcast %cst : f32 to vector<16x128xf32>
    %9 = arith.cmpf ogt, %6, %8 : vector<16x128xf32>
    %cst_4 = arith.constant 3.000000e+02 : f32
    %cst_5 = arith.constant 1.600000e+02 : f32
    %10 = vector.broadcast %cst_4 : f32 to vector<16x128xf32>
    %11 = vector.broadcast %cst_5 : f32 to vector<16x128xf32>
    %12 = arith.select %9, %10, %11 : vector<16x128xi1>, vector<16x128xf32>
    %13 = arith.mulf %12, %6 : vector<16x128xf32>
    %14 = arith.cmpf ogt, %3, %4 : vector<16x128xf32>
    %cst_6 = arith.constant 2.000000e-02 : f32
    %15 = vector.broadcast %cst_6 : f32 to vector<16x128xf32>
    %16 = arith.cmpf olt, %6, %15 : vector<16x128xf32>
    %cst_7 = arith.constant 2.000000e+00 : f32
    %17 = vector.broadcast %cst_7 : f32 to vector<16x128xf32>
    %18 = arith.select %16, %17, %13 : vector<16x128xi1>, vector<16x128xf32>
    %cst_8 = arith.constant 1.000000e+00 : f32
    %19 = vector.broadcast %cst_8 : f32 to vector<16x128xf32>
    %20 = arith.select %14, %19, %18 : vector<16x128xi1>, vector<16x128xf32>
    %21 = arith.mulf %20, %7 : vector<16x128xf32>
    %c0_9 = arith.constant 0 : index
    %c0_10 = arith.constant 0 : index
    %22 = vector.load %arg5[%c0_9, %c0_10] : memref<8x128xf32, #tpu.memory_space<vmem>>, vector<8x128xf32>
    %23 = vector.shape_cast %21 : vector<16x128xf32> to vector<2x8x128xf32>
    %cst_11 = arith.constant dense<0.000000e+00> : vector<8x128xf32>
    %24 = vector.multi_reduction <add>, %23, %cst_11 [0] : vector<2x8x128xf32> to vector<8x128xf32>
    %25 = arith.addf %22, %24 : vector<8x128xf32>
    %c0_12 = arith.constant 0 : index
    %c0_13 = arith.constant 0 : index
    %26 = vector.load %arg5[%c0_12, %c0_13] : memref<8x128xf32, #tpu.memory_space<vmem>>, vector<8x128xf32>
    tpu.vector_store %arg5[%c0_12, %c0_13], %25 {strides = array<i32>} : memref<8x128xf32, #tpu.memory_space<vmem>>, vector<8x128xf32>,
    %c0_i32_14 = arith.constant 0 : i32
    %27 = arith.cmpi eq, %arg1, %c0_i32_14 : i32
    %28 = arith.extui %27 : i1 to i32
    %c0_i32_15 = arith.constant 0 : i32
    %29 = arith.cmpi ne, %28, %c0_i32_15 : i32
    scf.if %29 {
      %c0_16 = arith.constant 0 : index
      %c0_17 = arith.constant 0 : index
      %30 = vector.load %arg5[%c0_16, %c0_17] : memref<8x128xf32, #tpu.memory_space<vmem>>, vector<8x128xf32>
      %31 = vector.shape_cast %30 : vector<8x128xf32> to vector<1x8x128xf32>
      %cst_18 = arith.constant dense<0.000000e+00> : vector<1xf32>
      %32 = vector.multi_reduction <add>, %31, %cst_18 [1, 2] : vector<1x8x128xf32> to vector<1xf32>
      %33 = vector.shape_cast %32 : vector<1xf32> to vector<1x1x1xf32>
      %34 = vector.extract %33[0, 0, 0] : f32 from vector<1x1x1xf32>
      %c0_19 = arith.constant 0 : index
      %c0_20 = arith.constant 0 : index
      %35 = memref.load %arg4[%c0_19, %c0_20] : memref<1x1xf32, #tpu.memory_space<smem>>
      memref.store %34, %arg4[%c0_19, %c0_20] : memref<1x1xf32, #tpu.memory_space<smem>>
    } else {
    }
    return
  }
  func.func @transform_0(%arg0: i32, %arg1: i32) -> (i32, i32) {
    %c1_i32 = arith.constant 1 : i32
    %0 = arith.muli %arg0, %c1_i32 : i32
    %1 = arith.addi %0, %arg1 : i32
    %c0_i32 = arith.constant 0 : i32
    %c0_i32_0 = arith.constant 0 : i32
    return %1, %c0_i32 : i32, i32
  }
  func.func @transform_1(%arg0: i32, %arg1: i32) -> (i32, i32) {
    %c1_i32 = arith.constant 1 : i32
    %0 = arith.muli %arg0, %c1_i32 : i32
    %1 = arith.addi %0, %arg1 : i32
    %c0_i32 = arith.constant 0 : i32
    %c0_i32_0 = arith.constant 0 : i32
    return %1, %c0_i32 : i32, i32
  }
  func.func @transform_2(%arg0: i32, %arg1: i32) -> (i32, i32) {
    %c0_i32 = arith.constant 0 : i32
    %c0_i32_0 = arith.constant 0 : i32
    return %arg0, %c0_i32 : i32, i32
  }
}

</mosaic_0001>

<bundles_post_ra>
// kernel: tpu_custom_call.1
= control target key start
LH: loop header
LB: loop body
LE: loop exit
PB: predicated region body
PF: predicated region fallthrough
CT: control target
= control target key end

     0   :  { %7 = vsyncpa [#allocation4], 0  ;;  %s242_s0 = inlined_call_operand.hbm [shape: f32[16,128], index: 0, kind: input, shape index: {}]   ;;  %s243_s1 = inlined_call_operand.hbm [shape: f32[16,128], index: 1, kind: input, shape index: {}]   ;;  %s244_s2 = inlined_call_operand.hbm [shape: f32[1,1], index: 2, kind: output, shape index: {}]  }
   0x1   :  { %8 = vsyncpa [#allocation7], 0 }
   0x2   :  { %9 = vsyncpa [#allocation5], 0  ;;  %s185_s9 = smov [#allocation3]   ;;  %s125_s13 = scalar_lea.hbm %s242_s0, 256 }
   0x3   :  { %s19_s10 = sshll.u32 %s185_s9, 4  ;;  %p126_p0 = scmp.ne.s32.totalorder %s242_s0, %s125_s13  ;;  %s20_s10 = int_to_ptr.vmem [resolvable:$true] %s19_s10 }
   0x4   :  { %p129_p1 = scmp.lt.u32.totalorder %s125_s13, %s242_s0 }
   0x6   :  { %p131_p2 = pnand %p129_p1, %p126_p0 }
   0x8   :  { %134 = shalt.err (!%p131_p2)
}
   0x9   :  { %s135_s18 = scalar_lea.vmem %s20_s10, 256  ;;  %p140_p4 = scmp.lt.s32.totalorder %s20_s10, %s20_s10 }
   0xa   :  { %p136_p3 = scmp.ne.s32.totalorder %s20_s10, %s135_s18  ;;  %p141_p5 = scmp.lt.s32.totalorder %s135_s18, %s135_s18 }
   0xc   :  { %p142_p6 = por %p141_p5, %p140_p4 }
   0xe   :  { %p143_p7 = pnand %p142_p6, %p136_p3 }
  0x10   :  { %146 = shalt.err (!%p143_p7)
}
  0x11   :  { %s186_s19 = smov 128   ;;  %s187_s20 = smov 8  }
  0x12   :  { %25 = dma.hbm_to_vmem [thread:$0]  %s242_s0, 256, %s20_s10, [#allocation4], %s186_s19, %s186_s19, %s187_s20  }
  0x13   :  { %s188_s23 = smov [#allocation6]   ;;  %s147_s27 = scalar_lea.hbm %s243_s1, 256 }
  0x14   :  { %s35_s24 = sshll.u32 %s188_s23, 4  ;;  %p148_p8 = scmp.ne.s32.totalorder %s243_s1, %s147_s27  ;;  %s36_s24 = int_to_ptr.vmem [resolvable:$true] %s35_s24 }
  0x15   :  { %p151_p9 = scmp.lt.u32.totalorder %s147_s27, %s243_s1 }
  0x17   :  { %p153_p10 = pnand %p151_p9, %p148_p8 }
  0x19   :  { %156 = shalt.err (!%p153_p10)
}
  0x1a   :  { %s157_s4 = scalar_lea.vmem %s36_s24, 256  ;;  %p162_p12 = scmp.lt.s32.totalorder %s36_s24, %s36_s24 }
  0x1b   :  { %p158_p11 = scmp.ne.s32.totalorder %s36_s24, %s157_s4  ;;  %p163_p13 = scmp.lt.s32.totalorder %s157_s4, %s157_s4 }
  0x1d   :  { %p164_p0 = por %p163_p13, %p162_p12 }
  0x1f   :  { %p165_p1 = pnand %p164_p0, %p158_p11 }
  0x21   :  { %168 = shalt.err (!%p165_p1)
}
  0x22   :  { %41 = dma.hbm_to_vmem [thread:$0]  %s243_s1, 256, %s36_s24, [#allocation7], %s186_s19, %s186_s19, %s187_s20  }
  0x23   :  { %179 = dma.done.wait [#allocation4], 256  }
  0x24   :  { %180 = vsyncadd [#allocation4], 4294967040 }
  0x25   :  { %181 = dma.done.wait [#allocation7], 256  }
  0x26   :  { %182 = vsyncadd [#allocation7], 4294967040  ;;  %v57_v0 = vld [vmem:[#allocation3] sm:$0xff]  ;;  %v58_v1 = vld [vmem:[#allocation3 + $0x8] sm:$0xff]  ;;  %v189_v8 = vmov 160.0   ;;  %s169_s8 = scalar_lea.hbm %s244_s2, 16 }
  0x27   :  { %v59_v2 = vld [vmem:[#allocation6] sm:$0xff]  ;;  %v60_v3 = vld [vmem:[#allocation6 + $0x8] sm:$0xff]  ;;  %p170_p2 = scmp.ne.s32.totalorder %s244_s2, %s169_s8  ;;  %p173_p3 = scmp.lt.u32.totalorder %s169_s8, %s244_s2 }
  0x28   :  { %v61_v4 = vsub.f32 %v57_v0, %v59_v2  ;;  %v63_v5 = vsub.f32 %v59_v2, %v57_v0  ;;  %v62_v6 = vsub.f32 %v58_v1, %v60_v3  ;;  %v64_v7 = vsub.f32 %v60_v3, %v58_v1 }
  0x29   :  { %vm73_vm2 = vcmp.gt.f32.partialorder %v57_v0, %v59_v2  ;;  %vm74_vm5 = vcmp.gt.f32.partialorder %v58_v1, %v60_v3  ;;  %p175_p4 = pnand %p173_p3, %p170_p2 }
  0x2a   :  { %vm67_vm0 = vcmp.gt.f32.partialorder %v63_v5, 0.1  ;;  %vm68_vm1 = vcmp.gt.f32.partialorder %v64_v7, 0.1  ;;  %vm75_vm3 = vcmp.lt.f32.partialorder %v63_v5, 0.02  ;;  %v65_v10 = vmul.f32 %v61_v4, %v61_v4 }
  0x2b   :  { %v69_v9 = vsel %vm67_vm0, 300.0, %v189_v8  ;;  %v70_v11 = vsel %vm68_vm1, 300.0, %v189_v8  ;;  %vm76_vm4 = vcmp.lt.f32.partialorder %v64_v7, 0.02  ;;  %v66_v13 = vmul.f32 %v62_v6, %v62_v6 }
  0x2c   :  { %v71_v12 = vmul.f32 %v69_v9, %v63_v5  ;;  %v72_v14 = vmul.f32 %v70_v11, %v64_v7 }
  0x2e   :  { %v77_v15 = vsel %vm75_vm3, 2.0, %v71_v12  ;;  %v78_v16 = vsel %vm76_vm4, 2.0, %v72_v14 }
  0x2f   :  { %v79_v17 = vsel %vm73_vm2, 1.0, %v77_v15  ;;  %v80_v18 = vsel %vm74_vm5, 1.0, %v78_v16 }
  0x30   :  { %v81_v19 = vmul.f32 %v79_v17, %v65_v10  ;;  %v82_v20 = vmul.f32 %v80_v18, %v66_v13 }
  0x32   :  { %v84_v21 = vadd.f32 %v82_v20, %v81_v19 }
  0x34   :  { %91 = vadd.xlane.f32.xlu0 %v84_v21 }
  0xc1   :  { %v92_v22 = vpop.xlane.xlu0 %91 }
  0xc2   :  { %v93_v23 = vrot.slane %v92_v22, 4 }
  0xc4   :  { %v94_v24 = vadd.f32 %v93_v23, %v92_v22 }
  0xc6   :  { %v95_v25 = vrot.slane %v94_v24, 2 }
  0xc8   :  { %v96_v26 = vadd.f32 %v95_v25, %v94_v24 }
  0xca   :  { %v97_v27 = vrot.slane %v96_v26, 1 }
  0xcc   :  { %v98_v28 = vadd.f32 %v97_v27, %v96_v26 }
  0xce   :  { %117 = vpush %v98_v28 }
  0xff   :  { %s118_s1 = spop %117 }
 0x100   :  { %101 = sst [smem:[#allocation8]] %s118_s1 }
 0x101   :  { %178 = shalt.err (!%p175_p4)
}
 0x102   :  { %s190_s13 = smov [#allocation8]  }
 0x103   :  { %109 = dma.smem_to_hbm %s190_s13, 16, %s244_s2, [#allocation5]  }
 0x104   :  { %183 = dma.done.wait [#allocation5], 16  }
 0x105   :  { %184 = vsyncadd [#allocation5], 4294967280 }
 0x106   :  { %113 = sfence }
 0x107   :  { %114 = vsyncpa [#allocation4], 1 }
 0x108   :  { %115 = vsyncpa [#allocation7], 1 }
 0x109   :  { %116 = vsyncpa [#allocation5], 1 }

</bundles_post_ra>
